<compile_context>
chip_gen: v7x
topology: tpu7x:2x2x1
jax: 0.10.0
libtpu: 0.0.40
codegen_flags: <defaults>
</compile_context>

<pallas_src>
import jax
import jax.numpy as jnp
from jax.experimental import pallas as pl
from jax.experimental.pallas import tpu as pltpu

_LANES = 128


def _device_defaults():
    """Return (n_cores, tile_rows) based on the attached TPU generation."""
    try:
        kind = jax.devices()[0].device_kind.lower()
    except Exception:  # pragma: no cover
        kind = ""
    if "v7" in kind:
        # 2 TensorCores/chip, ~3.2 TB/s HBM: bigger tiles keep the per-step DMA
        # time well above the ~0.35 us per-grid-step overhead.
        return 2, 2048
    # v5e / v6e: single TensorCore; 1024x128 f32 (512 KiB/block, ~2 MiB with
    # double-buffering) already sits on the measured 512->1024 roofline plateau.
    return 1, 1024


def _make_mse_partial_kernel(rows, eff_tile, steps, needs_mask):
    """Kernel accumulating per-lane partial sums of squared diffs into (8,128)."""

    def kernel(img_ref, tgt_ref, o_ref):
        x = img_ref[...]
        t = tgt_ref[...]
        # Narrow inputs (e.g. bf16): upcast inside the kernel; HBM traffic stays
        # at the narrow width.  f32 inputs: no cast emitted.
        if x.dtype != jnp.float32:
            x = x.astype(jnp.float32)
        if t.dtype != jnp.float32:
            t = t.astype(jnp.float32)
        diff = x - t
        dd = diff * diff

        if needs_mask:
            # Zero rows that lie past the real array.  `block` uses the
            # *unclamped* index so duplicated (clamped) edge blocks contribute
            # exactly zero -> no double counting, no wrapper-side padding.
            block = pl.program_id(0) * steps + pl.program_id(1)
            valid = rows - block * eff_tile  # may be <= 0 for clamped blocks
            row_idx = jax.lax.broadcasted_iota(jnp.int32, dd.shape, 0)
            dd = jnp.where(row_idx < valid, dd, 0.0)

        # Fold the (eff_tile,128) tile to one vreg-shaped (8,128) partial.
        # Leading-axis VPU adds; the single cross-lane reduce is in the wrapper.
        partial = jnp.sum(dd.reshape(-1, 8, _LANES), axis=0)

        @pl.when(pl.program_id(1) == 0)
        def _():
            o_ref[...] = jnp.zeros_like(o_ref)

        o_ref[...] += partial

    return kernel


def content_loss_forward(image, target, *, tile_rows=None, n_cores=None):
    """Pallas equivalent of Content_Loss.forward.

    Returns (image, loss) with loss == mean((image - target) ** 2).
    Mixed dtypes (e.g. f32 image vs bf16 target) are upcast to f32 in-kernel.
    """
    assert image.shape == target.shape, "image/target shape mismatch"
    total = int(image.size)
    if total == 0:
        return image, jnp.float32(0.0)

    auto_cores, auto_tile = _device_defaults()
    if n_cores is None:
        n_cores = auto_cores
    if tile_rows is None:
        tile_rows = auto_tile

    img_flat = image.reshape(-1)
    tgt_flat = target.reshape(-1)

    rows = total // _LANES
    rem = total - rows * _LANES

    # Sub-lane tail (< 128 elements): negligible, computed with plain jnp.
    if rem:
        dtail = (img_flat[rows * _LANES:].astype(jnp.float32)
                 - tgt_flat[rows * _LANES:].astype(jnp.float32))
        tail_sum = jnp.sum(dtail * dtail)
    else:
        tail_sum = jnp.float32(0.0)

    if rows == 0:
        return image, tail_sum / jnp.float32(total)

    prefix = rows * _LANES
    # When rem == 0 this slice is the identity (no copy); otherwise only a
    # cheap prefix slice+reshape (never a full zero-padded concatenate).
    img2d = img_flat[:prefix].reshape(rows, _LANES)
    tgt2d = tgt_flat[:prefix].reshape(rows, _LANES)

    # Native sublane multiple for the narrower input dtype: 8 rows/vreg for
    # 32-bit, 16 for 16-bit, 32 for 8-bit -> unmasked vector loads.
    min_item = min(jnp.dtype(image.dtype).itemsize, jnp.dtype(target.dtype).itemsize)
    sublane = max(8, 32 // max(min_item, 1))

    if rows <= tile_rows:
        # Tiny input: single block covering the whole row range (no pipeline
        # prologue), rounded up to the dtype's sublane tile.
        n_cores_eff = 1
        eff_tile = pl.cdiv(rows, sublane) * sublane
        steps = 1
    else:
        eff_tile = pl.cdiv(tile_rows, sublane) * sublane
        n_cores_eff = n_cores if rows >= n_cores * eff_tile else 1
        steps = pl.cdiv(rows, n_cores_eff * eff_tile)

    needs_mask = (n_cores_eff * steps * eff_tile) != rows
    last_block = pl.cdiv(rows, eff_tile) - 1
    clamp_needed = (n_cores_eff * steps - 1) > last_block

    def in_map(c, s):
        b = c * steps + s
        if clamp_needed:
            # Keep the DMA inside the array; the kernel's row mask zeroes the
            # (duplicated) data so it contributes nothing.
            b = jnp.minimum(b, last_block)
        return (b, 0)

    kernel = _make_mse_partial_kernel(rows, eff_tile, steps, needs_mask)

    bytes_accessed = (prefix * (jnp.dtype(image.dtype).itemsize
                                + jnp.dtype(target.dtype).itemsize)
                      + n_cores_eff * 8 * _LANES * 4)
    cost = pl.CostEstimate(flops=3 * prefix, transcendentals=0,
                           bytes_accessed=int(bytes_accessed))

    partials = pl.pallas_call(
        kernel,
        out_shape=jax.ShapeDtypeStruct((n_cores_eff * 8, _LANES), jnp.float32),
        grid_spec=pltpu.PrefetchScalarGridSpec(
            num_scalar_prefetch=0,
            grid=(n_cores_eff, steps),
            in_specs=[
                pl.BlockSpec((eff_tile, _LANES), in_map),
                pl.BlockSpec((eff_tile, _LANES), in_map),
            ],
            # Each core owns its own lane-dense (8,128) partial-sum block; the
            # block index is constant along the reduction axis `s`, so it stays
            # resident in VMEM and is written back once per core.
            out_specs=pl.BlockSpec((8, _LANES), lambda c, s: (c, 0)),
        ),
        compiler_params=pltpu.CompilerParams(
            # c: independent per-core partials; s: running accumulation.
            dimension_semantics=("parallel", "arbitrary"),
        ),
        cost_estimate=cost,
    )(img2d, tgt2d)

    loss = (jnp.sum(partials) + tail_sum) / jnp.float32(total)
    # Module's forward returns the input image unchanged (loss stored as an
    # attribute in PyTorch; returned here instead).
    return image, loss


if __name__ == "__main__":
    key = jax.random.PRNGKey(0)
    k_img, k_tgt = jax.random.split(key)

    # Primary case from the module spec: small NCHW image tensors.
    x = jax.random.normal(k_img, (2, 4, 16, 16), dtype=jnp.float32)
    target = jax.random.normal(k_tgt, (2, 4, 16, 16), dtype=jnp.float32)
    out_image, loss = content_loss_forward(x, target)
    jax.block_until_ready((out_image, loss))
    ref_loss = jnp.mean((x - target) ** 2)
    assert jnp.allclose(loss, ref_loss, rtol=1e-6, atol=1e-6), (loss, ref_loss)
    assert jnp.array_equal(out_image, x)

    # Large, tile-aligned path (1M elements, no masking).
    ka, kb = jax.random.split(jax.random.PRNGKey(1))
    xa = jax.random.normal(ka, (4, 64, 64, 64), dtype=jnp.float32)
    ta = jax.random.normal(kb, (4, 64, 64, 64), dtype=jnp.float32)
    _, la = content_loss_forward(xa, ta)
    jax.block_until_ready(la)
    ra = jnp.mean((xa - ta) ** 2)
    assert jnp.allclose(la, ra, rtol=1e-5, atol=1e-6), (la, ra)

    # Unaligned shape with forced multi-step / multi-core grid: exercises the
    # in-kernel row mask, block-index clamping, and the jnp lane tail.
    kc, kd = jax.random.split(jax.random.PRNGKey(2))
    xb = jax.random.normal(kc, (38450,), dtype=jnp.float32)
    tb = jax.random.normal(kd, (38450,), dtype=jnp.float32)
    _, lb = content_loss_forward(xb, tb, tile_rows=64, n_cores=2)
    jax.block_until_ready(lb)
    rb = jnp.mean((xb - tb) ** 2)
    assert jnp.allclose(lb, rb, rtol=1e-5, atol=1e-6), (lb, rb)

    # bf16 inputs (halved HBM traffic; f32 accumulation in-kernel).
    ke, kf = jax.random.split(jax.random.PRNGKey(3))
    xc = jax.random.normal(ke, (2, 3, 33, 65), dtype=jnp.float32).astype(jnp.bfloat16)
    tc = jax.random.normal(kf, (2, 3, 33, 65), dtype=jnp.float32).astype(jnp.bfloat16)
    _, lc = content_loss_forward(xc, tc)
    jax.block_until_ready(lc)
    rc = jnp.mean((xc.astype(jnp.float32) - tc.astype(jnp.float32)) ** 2)
    assert jnp.allclose(lc, rc, rtol=1e-5, atol=1e-6), (lc, rc)

    print("KERNEL_OK")
</pallas_src>

<mosaic_0001>
module attributes {stable_mosaic.version = 11 : i64} {
  func.func @kernel(%arg0: i32, %arg1: i32, %arg2: memref<16x128xf32, #tpu.memory_space<vmem>>, %arg3: memref<16x128xf32, #tpu.memory_space<vmem>>, %arg4: memref<8x128xf32, #tpu.memory_space<vmem>>) attributes {dimension_semantics = [#tpu.dimension_semantics<parallel>, #tpu.dimension_semantics<arbitrary>], iteration_bounds = array<i64: 1, 1>, scalar_prefetch = 0 : i64, scratch_operands = 0 : i64, tpu.core_type = #tpu.core_type<tc>, window_params = [{transform_indices = @transform_0, window_bounds = array<i64: 16, 128>}, {transform_indices = @transform_1, window_bounds = array<i64: 16, 128>}, {transform_indices = @transform_2, window_bounds = array<i64: 8, 128>}]} {
    %c0 = arith.constant 0 : index
    %c0_0 = arith.constant 0 : index
    %0 = vector.load %arg2[%c0, %c0_0] : memref<16x128xf32, #tpu.memory_space<vmem>>, vector<16x128xf32>
    %c0_1 = arith.constant 0 : index
    %c0_2 = arith.constant 0 : index
    %1 = vector.load %arg3[%c0_1, %c0_2] : memref<16x128xf32, #tpu.memory_space<vmem>>, vector<16x128xf32>
    %2 = arith.subf %0, %1 : vector<16x128xf32>
    %3 = arith.mulf %2, %2 : vector<16x128xf32>
    %4 = vector.shape_cast %3 : vector<16x128xf32> to vector<2x8x128xf32>
    %cst = arith.constant dense<0.000000e+00> : vector<8x128xf32>
    %5 = vector.multi_reduction <add>, %4, %cst [0] : vector<2x8x128xf32> to vector<8x128xf32>
    %c0_i32 = arith.constant 0 : i32
    %6 = arith.cmpi eq, %arg1, %c0_i32 : i32
    %7 = arith.extui %6 : i1 to i32
    %c0_i32_3 = arith.constant 0 : i32
    %8 = arith.cmpi ne, %7, %c0_i32_3 : i32
    scf.if %8 {
      %cst_8 = arith.constant 0.000000e+00 : f32
      %12 = vector.broadcast %cst_8 : f32 to vector<8x128xf32>
      %c0_9 = arith.constant 0 : index
      %c0_10 = arith.constant 0 : index
      %13 = vector.load %arg4[%c0_9, %c0_10] : memref<8x128xf32, #tpu.memory_space<vmem>>, vector<8x128xf32>
      tpu.vector_store %arg4[%c0_9, %c0_10], %12 {strides = array<i32>} : memref<8x128xf32, #tpu.memory_space<vmem>>, vector<8x128xf32>,
    } else {
    }
    %c0_4 = arith.constant 0 : index
    %c0_5 = arith.constant 0 : index
    %9 = vector.load %arg4[%c0_4, %c0_5] : memref<8x128xf32, #tpu.memory_space<vmem>>, vector<8x128xf32>
    %10 = arith.addf %9, %5 : vector<8x128xf32>
    %c0_6 = arith.constant 0 : index
    %c0_7 = arith.constant 0 : index
    %11 = vector.load %arg4[%c0_6, %c0_7] : memref<8x128xf32, #tpu.memory_space<vmem>>, vector<8x128xf32>
    tpu.vector_store %arg4[%c0_6, %c0_7], %10 {strides = array<i32>} : memref<8x128xf32, #tpu.memory_space<vmem>>, vector<8x128xf32>,
    return
  }
  func.func @transform_0(%arg0: i32, %arg1: i32) -> (i32, i32) {
    %c1_i32 = arith.constant 1 : i32
    %0 = arith.muli %arg0, %c1_i32 : i32
    %1 = arith.addi %0, %arg1 : i32
    %c0_i32 = arith.constant 0 : i32
    %c0_i32_0 = arith.constant 0 : i32
    return %1, %c0_i32 : i32, i32
  }
  func.func @transform_1(%arg0: i32, %arg1: i32) -> (i32, i32) {
    %c1_i32 = arith.constant 1 : i32
    %0 = arith.muli %arg0, %c1_i32 : i32
    %1 = arith.addi %0, %arg1 : i32
    %c0_i32 = arith.constant 0 : i32
    %c0_i32_0 = arith.constant 0 : i32
    return %1, %c0_i32 : i32, i32
  }
  func.func @transform_2(%arg0: i32, %arg1: i32) -> (i32, i32) {
    %c0_i32 = arith.constant 0 : i32
    %c0_i32_0 = arith.constant 0 : i32
    return %arg0, %c0_i32 : i32, i32
  }
}

</mosaic_0001>

<bundles_post_ra>
// kernel: tpu_custom_call.1
= control target key start
LH: loop header
LB: loop body
LE: loop exit
PB: predicated region body
PF: predicated region fallthrough
CT: control target
= control target key end

     0   :  { %7 = vsyncpa [#allocation3], 0  ;;  %s219_s0 = inlined_call_operand.hbm [shape: f32[16,128], index: 0, kind: input, shape index: {}]   ;;  %s220_s1 = inlined_call_operand.hbm [shape: f32[16,128], index: 1, kind: input, shape index: {}]   ;;  %s221_s2 = inlined_call_operand.hbm [shape: f32[8,128], index: 2, kind: output, shape index: {}]  }
   0x1   :  { %8 = vsyncpa [#allocation6], 0 }
   0x2   :  { %9 = vsyncpa [#allocation4], 0  ;;  %s163_s9 = smov [#allocation2]   ;;  %s91_s13 = scalar_lea.hbm %s219_s0, 256 }
   0x3   :  { %s19_s10 = sshll.u32 %s163_s9, 4  ;;  %p92_p0 = scmp.ne.s32.totalorder %s219_s0, %s91_s13  ;;  %s20_s10 = int_to_ptr.vmem [resolvable:$true] %s19_s10 }
   0x4   :  { %p95_p1 = scmp.lt.u32.totalorder %s91_s13, %s219_s0 }
   0x6   :  { %p97_p2 = pnand %p95_p1, %p92_p0 }
   0x8   :  { %100 = shalt.err (!%p97_p2)
}
   0x9   :  { %s101_s18 = scalar_lea.vmem %s20_s10, 256  ;;  %p106_p4 = scmp.lt.s32.totalorder %s20_s10, %s20_s10 }
   0xa   :  { %p102_p3 = scmp.ne.s32.totalorder %s20_s10, %s101_s18  ;;  %p107_p5 = scmp.lt.s32.totalorder %s101_s18, %s101_s18 }
   0xc   :  { %p108_p6 = por %p107_p5, %p106_p4 }
   0xe   :  { %p109_p7 = pnand %p108_p6, %p102_p3 }
  0x10   :  { %112 = shalt.err (!%p109_p7)
}
  0x11   :  { %s164_s19 = smov 128   ;;  %s165_s20 = smov 8  }
  0x12   :  { %25 = dma.hbm_to_vmem [thread:$0]  %s219_s0, 256, %s20_s10, [#allocation3], %s164_s19, %s164_s19, %s165_s20  }
  0x13   :  { %s166_s23 = smov [#allocation5]   ;;  %s113_s27 = scalar_lea.hbm %s220_s1, 256 }
  0x14   :  { %s35_s24 = sshll.u32 %s166_s23, 4  ;;  %p114_p8 = scmp.ne.s32.totalorder %s220_s1, %s113_s27  ;;  %s36_s24 = int_to_ptr.vmem [resolvable:$true] %s35_s24 }
  0x15   :  { %p117_p9 = scmp.lt.u32.totalorder %s113_s27, %s220_s1 }
  0x17   :  { %p119_p10 = pnand %p117_p9, %p114_p8 }
  0x19   :  { %122 = shalt.err (!%p119_p10)
}
  0x1a   :  { %s123_s4 = scalar_lea.vmem %s36_s24, 256  ;;  %p128_p12 = scmp.lt.s32.totalorder %s36_s24, %s36_s24 }
  0x1b   :  { %p124_p11 = scmp.ne.s32.totalorder %s36_s24, %s123_s4  ;;  %p129_p13 = scmp.lt.s32.totalorder %s123_s4, %s123_s4 }
  0x1d   :  { %p130_p0 = por %p129_p13, %p128_p12 }
  0x1f   :  { %p131_p1 = pnand %p130_p0, %p124_p11 }
  0x21   :  { %134 = shalt.err (!%p131_p1)
}
  0x22   :  { %41 = dma.hbm_to_vmem [thread:$0]  %s220_s1, 256, %s36_s24, [#allocation6], %s164_s19, %s164_s19, %s165_s20  }
  0x23   :  { %157 = dma.done.wait [#allocation3], 256  }
  0x24   :  { %158 = vsyncadd [#allocation3], 4294967040 }
  0x25   :  { %159 = dma.done.wait [#allocation6], 256  }
  0x26   :  { %160 = vsyncadd [#allocation6], 4294967040  ;;  %v52_v0 = vld [vmem:[#allocation2] sm:$0xff]  ;;  %v53_v1 = vld [vmem:[#allocation2 + $0x8] sm:$0xff]  ;;  %s167_s6 = smov [#allocation7]  }
  0x27   :  { %v54_v2 = vld [vmem:[#allocation5] sm:$0xff]  ;;  %v55_v3 = vld [vmem:[#allocation5 + $0x8] sm:$0xff]  ;;  %s75_s7 = sshll.u32 %s167_s6, 4  ;;  %s76_s7 = int_to_ptr.vmem [resolvable:$true] %s75_s7 }
  0x28   :  { %v56_v4 = vsub.f32 %v52_v0, %v54_v2  ;;  %v57_v5 = vsub.f32 %v53_v1, %v55_v3  ;;  %s135_s8 = scalar_lea.vmem %s76_s7, 128  ;;  %p140_p3 = scmp.lt.s32.totalorder %s76_s7, %s76_s7 }
  0x29   :  { %p136_p2 = scmp.ne.s32.totalorder %s76_s7, %s135_s8  ;;  %p141_p4 = scmp.lt.s32.totalorder %s135_s8, %s135_s8 }
  0x2a   :  { %v58_v6 = vmul.f32 %v56_v4, %v56_v4  ;;  %v59_v7 = vmul.f32 %v57_v5, %v57_v5 }
  0x2b   :  { %p142_p5 = por %p141_p4, %p140_p3 }
  0x2c   :  { %v60_v8 = vadd.f32 %v59_v7, %v58_v6 }
  0x2d   :  { %p143_p6 = pnand %p142_p5, %p136_p2 }
  0x2e   :  { %68 = vst [vmem:[#allocation7] sm:$0xff] %v60_v8 }
  0x2f   :  { %146 = shalt.err (!%p143_p6)
}
  0x30   :  { %s147_s10 = scalar_lea.hbm %s221_s2, 128 }
  0x31   :  { %p148_p7 = scmp.ne.s32.totalorder %s221_s2, %s147_s10  ;;  %p151_p8 = scmp.lt.u32.totalorder %s147_s10, %s221_s2 }
  0x33   :  { %p153_p9 = pnand %p151_p8, %p148_p7 }
  0x35   :  { %156 = shalt.err (!%p153_p9)
}
  0x36   :  { %78 = dma.vmem_to_hbm [thread:$0]  %s76_s7, 128, %s221_s2, [#allocation4]  }
  0x37   :  { %161 = dma.done.wait [#allocation4], 128  }
  0x38   :  { %162 = vsyncadd [#allocation4], 4294967168 }
  0x39   :  { %82 = vsyncpa [#allocation3], 1 }
  0x3a   :  { %83 = vsyncpa [#allocation6], 1 }
  0x3b   :  { %84 = vsyncpa [#allocation4], 1 }

</bundles_post_ra>
